<compile_context>
chip_gen: v5e
topology: v5e:2x2
jax: 0.10.0
libtpu: 0.0.40
codegen_flags: <defaults>
</compile_context>

<pallas_src>
import functools

import jax
import jax.numpy as jnp
from jax.experimental import pallas as pl
from jax.experimental.pallas import tpu as pltpu


def _round_up(x, m):
    return (x + m - 1) // m * m


def _gat_kernel(e_ref, neigh_ref, w_ref, out_ref, *, alpha):
    # e_ref:     (TB, N_pad)        f32 raw logits (val1+val2); padded slots = -1e30
    # neigh_ref: (TB, N_pad, D_in)  f32 or bf16 (zero-padded rows)
    # w_ref:     (D_in, D_out_pad)  f32 (zero-padded columns), grid-resident
    # out_ref:   (TB, D_out_pad)    f32 lane-dense slab
    tb, _, d_in = neigh_ref.shape

    # ---- LeakyReLU + softmax over the neighbor (lane) axis, all f32 ----------
    e = e_ref[...]
    e = jnp.where(e > 0, e, alpha * e)                    # LeakyReLU(alpha)
    e = e - jnp.max(e, axis=-1, keepdims=True)
    p = jnp.exp(e)
    attn = p / jnp.sum(p, axis=-1, keepdims=True)         # exact divide
    # TODO(synk): F.dropout(p=0.2) is identity in eval mode; a training-mode
    # variant would mask `attn` here with pltpu.prng_random_bits.

    # ---- attention-weighted neighbor aggregation in D_in space ---------------
    #   agg[b, :] = sum_n attn[b, n] * neigh[b, n, :]     (contraction over N)
    # (At demo sizes N_pad*D_in == 128, so a lane-dense packed layout could make
    #  this fully lane-parallel; kept generic since the kernel is overhead-bound.)
    neigh = neigh_ref[...].astype(jnp.float32)
    agg = jnp.einsum("bon,bnd->bod", attn[:, None, :], neigh,
                     preferred_element_type=jnp.float32)  # (TB, 1, D_in)
    agg = agg.reshape(tb, d_in)

    # ---- single dense MXU matmul: (TB, D_in) @ (D_in, D_out_pad) -------------
    out_ref[...] = jnp.dot(agg, w_ref[...],
                           preferred_element_type=jnp.float32).astype(out_ref.dtype)


def gat_layer(src, neigh, W, a, *, alpha=0.2, tb=None, neigh_dtype=jnp.bfloat16):
    """Pallas GAT layer.  src: [B, D_in], neigh: [B, N, D_in] -> [B, D_out].

    neigh_dtype: storage/DMA dtype of the neighbor block (bf16 default halves the
    dominant HBM stream; logits and all accumulation stay f32).  Pass None for a
    fully exact f32 path.
    tb: batch rows per grid step.  Default gives a 2-step grid (both v7x TCs get
    work); on v5e/v6e pass tb=B for a single step, ~256-512 at production scale.
    """
    B, D_in = src.shape
    _, N, _ = neigh.shape
    D_out = W.shape[1]
    f32 = jnp.float32
    ndt = f32 if neigh_dtype is None else neigh_dtype

    src_f = src.astype(f32)
    neigh_f = neigh.astype(f32)
    W_f = W.astype(f32)
    a_f = a.astype(f32)

    # --- fold the attention projections through W (exact re-association) ------
    #   val1[b]    = (src @ W) @ a1   = src   @ (W @ a1)
    #   val2[b, n] = (neigh @ W) @ a2 = neigh @ (W @ a2)
    # Tiny f32 matvecs; XLA fuses them into the input producers, and the kernel
    # gets f32-exact logits even when neigh itself is shipped as bf16.
    wa1 = W_f @ a_f[:D_out, 0]                              # (D_in,)
    wa2 = W_f @ a_f[D_out:, 0]                              # (D_in,)
    val1 = src_f @ wa1                                      # (B,)
    val2 = jnp.einsum("bnd,d->bn", neigh_f, wa2)            # (B, N)
    e_raw = val1[:, None] + val2                            # (B, N) raw logits

    # --- padding: lane-dense output, sublane-aligned tiles, masked logits -----
    D_out_pad = _round_up(D_out, 128)
    N_pad = _round_up(N, 8)
    if tb is None:
        tb = _round_up(max((B + 1) // 2, 8), 8)             # 2-step grid default
    tb = _round_up(min(max(int(tb), 1), max(B, 8)), 8)
    B_pad = _round_up(B, tb)

    NEG = jnp.float32(-1e30)      # padded slots: exp underflows to exactly 0
    e_p = jnp.full((B_pad, N_pad), NEG, f32).at[:B, :N].set(e_raw)
    neigh_p = jnp.zeros((B_pad, N_pad, D_in), ndt).at[:B, :N].set(neigh_f.astype(ndt))
    W_pad = jnp.zeros((D_in, D_out_pad), f32).at[:, :D_out].set(W_f)

    grid = (B_pad // tb,)

    # --- VMEM budget: double-buffered blocks + resident W + headroom ----------
    def _blk_bytes(shape, dtype):
        p = list(shape)
        p[-1] = _round_up(p[-1], 128)
        if len(p) >= 2:
            p[-2] = _round_up(p[-2], 8)
        n = 1
        for s in p:
            n *= s
        return n * jnp.dtype(dtype).itemsize

    vmem_bytes = (4 * 1024 * 1024
                  + 2 * _blk_bytes((tb, N_pad), f32)
                  + 2 * _blk_bytes((tb, N_pad, D_in), ndt)
                  + 2 * _blk_bytes((D_in, D_out_pad), f32)
                  + 2 * _blk_bytes((tb, D_out_pad), f32))
    vmem_bytes = int(min(64 * 1024 * 1024, max(8 * 1024 * 1024, vmem_bytes)))

    out = pl.pallas_call(
        functools.partial(_gat_kernel, alpha=float(alpha)),
        out_shape=jax.ShapeDtypeStruct((B_pad, D_out_pad), f32),
        grid_spec=pltpu.PrefetchScalarGridSpec(
            num_scalar_prefetch=0,
            grid=grid,
            in_specs=[
                pl.BlockSpec((tb, N_pad), lambda i: (i, 0)),
                pl.BlockSpec((tb, N_pad, D_in), lambda i: (i, 0, 0)),
                pl.BlockSpec((D_in, D_out_pad), lambda i: (0, 0)),
            ],
            out_specs=pl.BlockSpec((tb, D_out_pad), lambda i: (i, 0)),
        ),
        compiler_params=pltpu.CompilerParams(
            dimension_semantics=("parallel",),
            vmem_limit_bytes=vmem_bytes,
        ),
    )(e_p, neigh_p, W_pad)
    # Padded batch rows (b >= B) hold harmless garbage; slice them off.
    return out[:B, :D_out]


def gat_reference(src, neigh, W, a, *, alpha=0.2):
    """Pure-JAX reference of the PyTorch forward (eval mode), original op order."""
    D_out = W.shape[1]
    Wh1 = src @ W                                    # (B, D_out)
    Wh2 = jnp.einsum("bnd,de->bne", neigh, W)        # (B, N, D_out)
    v1 = Wh1 @ a[:D_out, :]                          # (B, 1)
    v2 = jnp.einsum("bne,e->bn", Wh2, a[D_out:, 0])  # (B, N)
    e = v1 + v2
    e = jnp.where(e > 0, e, alpha * e)
    attn = jax.nn.softmax(e, axis=1)                 # (B, N)
    return jnp.einsum("bn,bne->be", attn, Wh2)       # (B, D_out)


def xavier_uniform(key, shape, gain):
    # PyTorch xavier_uniform_ for a 2D tensor: fan_in = shape[1], fan_out = shape[0]
    fan_in, fan_out = shape[1], shape[0]
    bound = gain * (6.0 / (fan_in + fan_out)) ** 0.5
    return jax.random.uniform(key, shape, jnp.float32, -bound, bound)


if __name__ == "__main__":
    B, N, D_in, D_out = 64, 8, 16, 32
    alpha = 0.2

    key = jax.random.PRNGKey(0)
    k_src, k_neigh, k_W, k_a = jax.random.split(key, 4)

    src = jax.random.normal(k_src, (B, D_in), jnp.float32)
    neigh = jax.random.normal(k_neigh, (B, N, D_in), jnp.float32)

    # Deterministic parameter init mimicking nn.init.xavier_uniform_(gain=1.414).
    W = xavier_uniform(k_W, (D_out, D_in), gain=1.414).T        # (D_in, D_out)
    a = xavier_uniform(k_a, (2 * D_out, 1), gain=1.414)         # (2*D_out, 1)

    ref = gat_reference(src, neigh, W, a, alpha=alpha)

    # Default path: bf16 neigh storage/DMA, f32 logits / softmax / accumulation.
    out = jax.block_until_ready(gat_layer(src, neigh, W, a, alpha=alpha))
    assert out.shape == (B, D_out)
    assert jnp.allclose(out, ref, rtol=5e-2, atol=5e-2), (
        f"bf16-neigh path max abs err = {jnp.max(jnp.abs(out - ref))}")

    # Fully exact f32 path, single grid step (v5e/v6e style).
    out_f32 = jax.block_until_ready(
        gat_layer(src, neigh, W, a, alpha=alpha, neigh_dtype=None, tb=B))
    assert jnp.allclose(out_f32, ref, rtol=1e-3, atol=1e-3), (
        f"f32 path max abs err = {jnp.max(jnp.abs(out_f32 - ref))}")

    print("KERNEL_OK")
</pallas_src>

<mosaic_0001>
module attributes {stable_mosaic.version = 11 : i64} {
  func.func @_gat_kernel(%arg0: i32, %arg1: memref<32x8xf32, #tpu.memory_space<vmem>>, %arg2: memref<32x8x16xbf16, #tpu.memory_space<vmem>>, %arg3: memref<16x128xf32, #tpu.memory_space<vmem>>, %arg4: memref<32x128xf32, #tpu.memory_space<vmem>>) attributes {dimension_semantics = [#tpu.dimension_semantics<parallel>], iteration_bounds = array<i64: 2>, scalar_prefetch = 0 : i64, scratch_operands = 0 : i64, tpu.core_type = #tpu.core_type<tc>, window_params = [{transform_indices = @transform_0, window_bounds = array<i64: 32, 8>}, {transform_indices = @transform_1, window_bounds = array<i64: 32, 8, 16>}, {pipeline_mode = #tpu.pipeline_mode<synchronous>, transform_indices = @transform_2, window_bounds = array<i64: 16, 128>}, {transform_indices = @transform_3, window_bounds = array<i64: 32, 128>}]} {
    %c0 = arith.constant 0 : index
    %c0_0 = arith.constant 0 : index
    %0 = vector.load %arg1[%c0, %c0_0] : memref<32x8xf32, #tpu.memory_space<vmem>>, vector<32x8xf32>
    %cst = arith.constant 0.000000e+00 : f32
    %1 = vector.broadcast %cst : f32 to vector<32x8xf32>
    %2 = arith.cmpf ogt, %0, %1 : vector<32x8xf32>
    %cst_1 = arith.constant 2.000000e-01 : f32
    %3 = vector.broadcast %cst_1 : f32 to vector<32x8xf32>
    %4 = arith.mulf %3, %0 : vector<32x8xf32>
    %5 = arith.select %2, %0, %4 : vector<32x8xi1>, vector<32x8xf32>
    %cst_2 = arith.constant dense<0xFF800000> : vector<32xf32>
    %6 = vector.multi_reduction <maximumf>, %5, %cst_2 [1] : vector<32x8xf32> to vector<32xf32>
    %7 = vector.shape_cast %6 : vector<32xf32> to vector<32x1xf32>
    %8 = vector.broadcast %7 : vector<32x1xf32> to vector<32x8xf32>
    %9 = arith.subf %5, %8 : vector<32x8xf32>
    %10 = math.exp %9 : vector<32x8xf32>
    %cst_3 = arith.constant dense<0.000000e+00> : vector<32xf32>
    %11 = vector.multi_reduction <add>, %10, %cst_3 [1] : vector<32x8xf32> to vector<32xf32>
    %12 = vector.shape_cast %11 : vector<32xf32> to vector<32x1xf32>
    %13 = vector.broadcast %12 : vector<32x1xf32> to vector<32x8xf32>
    %14 = arith.divf %10, %13 : vector<32x8xf32>
    %c0_4 = arith.constant 0 : index
    %c0_5 = arith.constant 0 : index
    %c0_6 = arith.constant 0 : index
    %15 = vector.load %arg2[%c0_4, %c0_5, %c0_6] : memref<32x8x16xbf16, #tpu.memory_space<vmem>>, vector<32x8x16xbf16>
    %16 = arith.extf %15 : vector<32x8x16xbf16> to vector<32x8x16xf32>
    %17 = vector.shape_cast %14 : vector<32x8xf32> to vector<32x1x8xf32>
    "tpu.trace_start"() <{level = 10 : i32, message = "bon,bnd->bod"}> : () -> ()
    %cst_7 = arith.constant dense<0.000000e+00> : vector<32x1x16xf32>
    %18 = tpu.matmul %17, %16, %cst_7 {dimension_numbers = #tpu.dot_dimension_numbers<[2], [1], [1], [2], [0, 0, 0, 1, 1, 2], [0], [0]>} : vector<32x1x8xf32>, vector<32x8x16xf32>, vector<32x1x16xf32> -> vector<32x1x16xf32>
    "tpu.trace_stop"() : () -> ()
    %19 = vector.shape_cast %18 : vector<32x1x16xf32> to vector<32x16xf32>
    %c0_8 = arith.constant 0 : index
    %c0_9 = arith.constant 0 : index
    %20 = vector.load %arg3[%c0_8, %c0_9] : memref<16x128xf32, #tpu.memory_space<vmem>>, vector<16x128xf32>
    %cst_10 = arith.constant dense<0.000000e+00> : vector<32x128xf32>
    %21 = tpu.matmul %19, %20, %cst_10 {dimension_numbers = #tpu.dot_dimension_numbers<[1], [0], [0], [1], [0, 0, 1, 1], [], []>} : vector<32x16xf32>, vector<16x128xf32>, vector<32x128xf32> -> vector<32x128xf32>
    %c0_11 = arith.constant 0 : index
    %c0_12 = arith.constant 0 : index
    %22 = vector.load %arg4[%c0_11, %c0_12] : memref<32x128xf32, #tpu.memory_space<vmem>>, vector<32x128xf32>
    tpu.vector_store %arg4[%c0_11, %c0_12], %21 {strides = array<i32>} : memref<32x128xf32, #tpu.memory_space<vmem>>, vector<32x128xf32>,
    return
  }
  func.func @transform_0(%arg0: i32) -> (i32, i32) {
    %c0_i32 = arith.constant 0 : i32
    %c0_i32_0 = arith.constant 0 : i32
    return %arg0, %c0_i32 : i32, i32
  }
  func.func @transform_1(%arg0: i32) -> (i32, i32, i32) {
    %c0_i32 = arith.constant 0 : i32
    %c0_i32_0 = arith.constant 0 : i32
    %c0_i32_1 = arith.constant 0 : i32
    return %arg0, %c0_i32, %c0_i32_0 : i32, i32, i32
  }
  func.func @transform_2(%arg0: i32) -> (i32, i32) {
    %c0_i32 = arith.constant 0 : i32
    %c0_i32_0 = arith.constant 0 : i32
    %c0_i32_1 = arith.constant 0 : i32
    return %c0_i32, %c0_i32_0 : i32, i32
  }
  func.func @transform_3(%arg0: i32) -> (i32, i32) {
    %c0_i32 = arith.constant 0 : i32
    %c0_i32_0 = arith.constant 0 : i32
    return %arg0, %c0_i32 : i32, i32
  }
}

</mosaic_0001>

<bundles_post_ra>
// kernel: tpu_custom_call.1
= control target key start
LH: loop header
LB: loop body
LE: loop exit
PB: predicated region body
PF: predicated region fallthrough
CT: control target
= control target key end

     0   :  { %8 = vsyncpa [#allocation3], 0  ;;  %s1905_s0 = inlined_call_operand.vmem [shape: f32[64,8], index: 0, kind: input, shape index: {}]   ;;  %s1906_s1 = inlined_call_operand.vmem [shape: bf16[64,8,16], index: 1, kind: input, shape index: {}]   ;;  %s1907_s2 = inlined_call_operand.vmem [shape: f32[16,128], index: 2, kind: input, shape index: {}]   ;;  %s1908_s3 = inlined_call_operand.hbm [shape: f32[64,128], index: 3, kind: output, shape index: {}]  }
   0x1   :  { %10 = vsyncpa [#allocation3 + $0x1], 0  ;;  %s1609_s12 = smov 0   ;;  %s1611_s13 = smov 0  }
   0x2   :  { %s1613_s14 = smov 0   ;;  %s1615_s15 = smov 0  }
   0x3 LB: > { %s1630_s16 = sadd.s32 4294967295, %s1585_s15   ;;  %s1336_s17 = sadd.s32 4294967294, %s1585_s15   ;;  %s1585_s15 = sphi %s1615_s15, %s1918_s15   ;;  %s1581_s14 = sphi %s1613_s14, %s1917_s14   ;;  %s1577_s13 = sphi %s1611_s13, %s1916_s13   ;;  %s1573_s12 = sphi %s1609_s12, %s1915_s12  }
   0x4   : > { %s1634_s18 = sadd.s32 1, %s1585_s15   ;;  %s96_s19 = sadd.s32 1, %s1581_s14 }
   0x5   : > { %s93_s20 = ssub.s32 %s1585_s15, %s1634_s18  ;;  %p106_p0 = scmp.ne.s32.totalorder %s1581_s14, %s1577_s13 }
   0x6   : > { %p94_p1 = scmp.eq.s32.totalorder %s93_s20, 0  ;;  %p107_p2 = scmp.eq.s32.totalorder %s1630_s16, 1 }
   0x7   : > { %p112_p3 = scmp.ne.s32.totalorder %s1577_s13, %s1573_s12  ;;  %p113_p4 = scmp.eq.s32.totalorder %s1336_s17, 1 }
   0x8   : > { %s1645_s21 = scalar_select %p94_p1, %s1581_s14, %s96_s19  }
   0x9   : > { %p1647_p5 = por %p107_p2, %p106_p0  ;;  %p1651_p6 = por %p113_p4, %p112_p3 }
   0xa   : > { %p1339_p7 = scmp.ge.s32.totalorder %s1585_s15, 1  ;;  %p152_p8 = scmp.lt.s32.totalorder %s1585_s15, 3 }
   0xc   : > { %p153_p9 = pnand %p1339_p7, %p152_p8 }
   0xd   : > { %s1341_s24 = sshll.u32 (!%p153_p9), %s1630_s16, 2  ;;  %s1682_s29 = sshll.u32 (!%p153_p9), %s1630_s16, 5 }
   0xe   : > { %156 = sbr.rel (%p153_p9) target bundleno = 623 (0x26f), region = 32  ;;  %p182_p10 = scmp.lt.s32.totalorder (!%p153_p9), %s1341_s24, 7 }
   0xf   : > { %p188_p11 = scmp.lt.s32.totalorder (!%p153_p9), %s1682_s29, 63  ;;  %s178_s16 = sand.u32 (!%p153_p9), 1, %s1577_s13  }
  0x10   : > { %s1340_s17 = sshll.u32 (!%p153_p9), %s178_s16, 5 }
  0x11   : > { %s180_s19 = scalar_lea.vmem (!%p153_p9), [#allocation2], %s1340_s17 }
  0x12   : > { %s1259_s26 = sshll.u32 (!%p153_p9), %s180_s19, 4  ;;  %s1260_s26 = int_to_ptr.vmem [resolvable:$true] %s1259_s26 }
  0x13   : > { %s1920_s24 = smov (!%p182_p10, %s1341_s24), 7  ;;  %vm210_vm0 = vcmask 64512  }
  0x14   : > { %s1342_s25 = sshll.u32 %s1920_s24, 3 }
  0x15   : > { %s185_s28 = scalar_lea.vmem %s1905_s0, %s1342_s25  ;;  %s1258_s25 = scalar_lea.hbm %s1908_s3, %s1682_s29 }
  0x16   : > { %v196_v0 = vld [vmem:[%s185_s28 + $0x10] sm:$0xff]  ;;  %v194_v1 = vld [vmem:[%s185_s28] sm:$0xff]  ;;  %v197_v2 = vld [vmem:[%s185_s28 + $0x18] sm:$0xff]  ;;  %s189_s30 = scalar_select %p188_p11, %s1682_s29, 63 }
  0x17   : > { %vm200_vm1 = vcmp.gt.f32.partialorder %v196_v0, 0.0  ;;  %v204_v3 = vmul.f32 0.2, %v196_v0  ;;  %vm198_vm2 = vcmp.gt.f32.partialorder %v194_v1, 0.0  ;;  %v202_v4 = vmul.f32 0.2, %v194_v1 }
  0x18   : > { %vm201_vm3 = vcmp.gt.f32.partialorder %v197_v2, 0.0  ;;  %v205_v5 = vmul.f32 0.2, %v197_v2  ;;  %v195_v6 = vld [vmem:[%s185_s28 + $0x8] sm:$0xff]  ;;  %s1344_s4 = sshll.u32 %s189_s30, 2  ;;  %s1261_s27 = sshll.u32 %s1258_s25, 4  ;;  %s1262_s27 = int_to_ptr.hbm [resolvable:$true] %s1261_s27 }
  0x19   : > { %v208_v7 = vsel %vm200_vm1, %v196_v0, %v204_v3  ;;  %v206_v8 = vsel %vm198_vm2, %v194_v1, %v202_v4  ;;  %v203_v9 = vmul.f32 0.2, %v195_v6  ;;  %vm199_vm4 = vcmp.gt.f32.partialorder %v195_v6, 0.0  ;;  %s1689_s7 = scalar_lea.vmem %s1906_s1, %s1344_s4  ;;  %s1247_s28 = scalar_lea.sflag [#allocation3], %s178_s16 }
  0x1a   : > { %v217_v10 = vsel %vm210_vm0, %v208_v7, -inf  ;;  %v211_v11 = vsel %vm210_vm0, %v206_v8, -inf  ;;  %v209_v12 = vsel %vm201_vm3, %v197_v2, %v205_v5  ;;  %v1388_v36 = vld [vmem:[%s1689_s7] sm:$0xff]   ;;  %v1451_v38 = vld [vmem:[%s1689_s7 + $0x8] sm:$0xff]   ;;  %v1452_v42 = vld [vmem:[%s1689_s7 + $0x10] sm:$0xff]   ;;  %s1537_s30 = sshra.s32 %s1262_s27, 4  ;;  %s1538_s30 = int_to_ptr.hbm [resolvable:$true] %s1537_s30 }
  0x1b   : > { %218 = vmax.xlane.f32.xlu1 %v217_v10  ;;  %212 = vmax.xlane.f32.xlu0 %v211_v11  ;;  %v220_v13 = vsel %vm210_vm0, %v209_v12, -inf  ;;  %v207_v14 = vsel %vm199_vm4, %v195_v6, %v203_v9  ;;  %v1389_v37 = vunpack.c.l.bf16 %v1388_v36  ;;  %v1393_v39 = vunpack.c.l.bf16 %v1451_v38  ;;  %v1695_v43 = vld [vmem:[%s1689_s7 + $0x18] sm:$0xff]   ;;  %v1698_v44 = vld [vmem:[%s1689_s7 + $0x30] sm:$0xff]   ;;  %v1705_v50 = vld [vmem:[%s1689_s7 + $0x40] sm:$0xff]   ;;  %s1539_s4 = scalar_lea.hbm %s1538_s30, 32  ;;  %p1544_p1 = scmp.lt.s32.totalorder %s1538_s30, %s1908_s3 }
  0x1c   : > { %221 = vmax.xlane.f32.xlu2 %v220_v13  ;;  %v214_v15 = vsel %vm210_vm0, %v207_v14, -inf  ;;  %v1394_v40 = vunpack.c.h.bf16 %v1451_v38  ;;  %v1390_v41 = vunpack.c.h.bf16 %v1388_v36  ;;  %v1397_v45 = vunpack.c.l.bf16 %v1452_v42  ;;  %v1454_v1 = vld [vmem:[%s1689_s7 + $0x20] sm:$0xff]   ;;  %p1540_p12 = scmp.ne.s32.totalorder %s1538_s30, %s1539_s4 }
  0x1d   : > { %420 = vmatpush.msra.mxu1 %v1389_v37  ;;  %464 = vmatpush.msra.mxu2 %v1393_v39  ;;  %v1402_v46 = vunpack.c.h.bf16 %v1695_v43  ;;  %v1413_v47 = vunpack.c.l.bf16 %v1698_v44  ;;  %v1421_v51 = vunpack.c.l.bf16 %v1705_v50  ;;  %v1401_v10 = vunpack.c.l.bf16 %v1695_v43  ;;  %v1457_v43 = vld [vmem:[%s1689_s7 + $0x38] sm:$0xff]  }
  0x1e   : > { %486 = vmatpush.msra.mxu3 %v1394_v40  ;;  %v1405_v11 = vunpack.c.l.bf16 %v1454_v1  ;;  %p1541_p13 = pnand %p1540_p12, %p1647_p5 }
  0x1f   : > { %442 = vmatpush.msrb.mxu1 %v1390_v41  ;;  %508 = vmatpush.msrb.mxu2 %v1397_v45 }
  0x20   : > { %574 = vmatpush.msrb.mxu3 %v1402_v46  ;;  %684 = vmatpush.msra.mxu0 %v1413_v47  ;;  %v1414_v46 = vunpack.c.h.bf16 %v1698_v44  ;;  %v1765_v47 = vld [vmem:[%s1689_s7 + $0x60] sm:$0xff]   ;;  %v1459_v44 = vld [vmem:[%s1689_s7 + $0x48] sm:$0xff]   ;;  %p1542_p0 = pneg %p1541_p13 }
  0x22   : > { %772 = vmatpush.msrb.mxu0 %v1421_v51  ;;  %v1417_v51 = vunpack.c.l.bf16 %v1457_v43 }
  0x23   : > { %215 = vmax.xlane.f32.xlu0 %v214_v15 }
  0x8e   : > { %v219_v16 = vpop.xlane.xlu1 %218  ;;  %v213_v17 = vpop.xlane.xlu0 %212 }
  0x8f   : > { %v225_v18 = vsub.f32 %v208_v7, %v219_v16  ;;  %v223_v19 = vsub.f32 %v206_v8, %v213_v17  ;;  %v222_v20 = vpop.xlane.xlu2 %221  ;;  %v1398_v8 = vunpack.c.h.bf16 %v1452_v42 }
  0x90   : > { %v226_v21 = vsub.f32 %v209_v12, %v222_v20 }
  0x91   : > { %v231_v22 = vmul.f32 1.442695, %v225_v18  ;;  %v227_v23 = vmul.f32 1.442695, %v223_v19 }
  0x92   : > { %v233_v24 = vmul.f32 1.442695, %v226_v21 }
  0x93   : > { %1507 = vpow2.f32 %v231_v22  ;;  %v1455_v22 = vld [vmem:[%s1689_s7 + $0x28] sm:$0xff]  }
  0x94   : > { %1509 = vpow2.f32 %v227_v23  ;;  %v1410_v36 = vunpack.c.h.bf16 %v1455_v22 }
  0x95   : > { %1511 = vpow2.f32 %v233_v24 }
  0x96   : > { %v216_v25 = vpop.xlane.xlu0 %215 }
  0x97   : > { %v224_v26 = vsub.f32 %v207_v14, %v216_v25 }
  0x99   : > { %v1665_v27 = vpop.eup %1507  ;;  %v229_v28 = vmul.f32 1.442695, %v224_v26  ;;  %v1406_v26 = vunpack.c.h.bf16 %v1454_v1 }
  0x9a   : > { %v1667_v29 = vpop.eup %1509  ;;  %v241_v30 = vsel %vm210_vm0, %v1665_v27, 0.0 }
  0x9b   : > { %1513 = vpow2.f32 %v229_v28  ;;  %242 = vadd.xlane.f32.xlu0 %v241_v30  ;;  %v235_v31 = vsel %vm210_vm0, %v1667_v29, 0.0  ;;  %v1673_v32 = vpop.eup %1511  ;;  %v1738_v28 = vld [vmem:[%s1689_s7 + $0x50] sm:$0xff]  }
  0x9c   : > { %236 = vadd.xlane.f32.xlu1 %v235_v31  ;;  %v244_v34 = vsel %vm210_vm0, %v1673_v32, 0.0  ;;  %v1429_v39 = vunpack.c.l.bf16 %v1738_v28 }
  0xa1   : > { %v1675_v33 = vpop.eup %1513 }
  0xa2   : > { %v238_v35 = vsel %vm210_vm0, %v1675_v33, 0.0 }
  0xa3   : > { %239 = vadd.xlane.f32.xlu2 %v238_v35  ;;  %v1409_v35 = vunpack.c.l.bf16 %v1455_v22 }
  0xa4   : > { %245 = vadd.xlane.f32.xlu1 %v244_v34 }
 0x10e   : > { %v1702_v49 = vpop.xlane.xlu0 %242 }
 0x10f   : > { %v237_v48 = vpop.xlane.xlu1 %236  ;;  %vm282_vm12 = vweird.f32 %v1702_v49  ;;  %v288_v20 = vand.u32 2147483648, %v1702_v49  ;;  %v286_v24 = vand.u32 2147483647, %v1702_v49 }
 0x110   : > { %1515 = vrcp.f32 %v237_v48  ;;  %v258_v57 = vand.u32 2147483648, %v237_v48  ;;  %v256_v59 = vand.u32 2147483647, %v237_v48  ;;  %vm252_vm6 = vweird.f32 %v237_v48 }
 0x111   : > { %1517 = vrcp.f32 %v1702_v49  ;;  %v289_v37 = vor.u32 1.1754944e-38, %v288_v20  ;;  %vm287_vm1 = vcmp.eq.f32.partialorder %v286_v24, 8.507059e+37 }
 0x112   : > { %v259_v63 = vor.u32 1.1754944e-38, %v258_v57  ;;  %vm257_vm8 = vcmp.eq.f32.partialorder %v256_v59, 8.507059e+37  ;;  %v1464_v59 = vld [vmem:[%s1689_s7 + $0x70] sm:$0xff]  }
 0x113   : > { %v1446_v22 = vunpack.c.h.bf16 %v1464_v59 }
 0x116   : > { %v1516_v52 = vpop.eup %1515  ;;  %v240_v53 = vpop.xlane.xlu2 %239 }
 0x117   : > { %v248_v54 = vmul.f32 %v1516_v52, %v237_v48  ;;  %1519 = vrcp.f32 %v240_v53  ;;  %v1709_v55 = vpop.eup %1517  ;;  %vm253_vm5 = vweird.f32 %v1516_v52  ;;  %v273_v3 = vand.u32 2147483648, %v240_v53  ;;  %v1714_v6 = vpop.xlane.xlu1 %245 }
 0x118   : > { %v278_v60 = vmul.f32 %v1709_v55, %v1702_v49  ;;  %vm254_vm7 = vmor %vm252_vm6, %vm253_vm5  ;;  %vm267_vm9 = vweird.f32 %v240_v53  ;;  %v271_v13 = vand.u32 2147483647, %v240_v53  ;;  %1521 = vrcp.f32 %v1714_v6 }
 0x119   : > { %v249_v56 = vsub.f32 1.0, %v248_v54  ;;  %v274_v14 = vor.u32 1.1754944e-38, %v273_v3  ;;  %vm283_vm13 = vweird.f32 %v1709_v55  ;;  %v1437_v54 = vunpack.c.l.bf16 %v1765_v47 }
 0x11a   : > { %v279_v5 = vsub.f32 1.0, %v278_v60  ;;  %vm272_vm14 = vcmp.eq.f32.partialorder %v271_v13, 8.507059e+37  ;;  %vm1744_vm15 = vmor %vm282_vm12, %vm283_vm13  ;;  %vm297_vm2 = vweird.f32 %v1714_v6  ;;  %v301_v57 = vand.u32 2147483647, %v1714_v6 }
 0x11b   : > { %v250_v58 = vmul.f32 %v1516_v52, %v249_v56  ;;  %vm1142_vm6 = vcmask 1041409   ;;  %vm1204_vm12 = vcmask 130048  }
 0x11c   : > { %v280_v17 = vmul.f32 %v1709_v55, %v279_v5  ;;  %vm302_vm5 = vcmp.eq.f32.partialorder %v301_v57, 8.507059e+37 }
 0x11d   : > { %v1520_v61 = vpop.eup %1519  ;;  %v251_v62 = vadd.f32 %v1516_v52, %v250_v58  ;;  %v1422_v58 = vunpack.c.h.bf16 %v1705_v50  ;;  %v1445_v50 = vunpack.c.l.bf16 %v1464_v59 }
 0x11e   : > { %v263_v0 = vmul.f32 %v1520_v61, %v240_v53  ;;  %vm268_vm10 = vweird.f32 %v1520_v61  ;;  %v281_v23 = vadd.f32 %v1709_v55, %v280_v17 }
 0x11f   : > { %v255_v2 = vsel %vm254_vm7, %v1516_v52, %v251_v62  ;;  %vm269_vm11 = vmor %vm267_vm9, %vm268_vm10  ;;  %v1418_v52 = vunpack.c.h.bf16 %v1457_v43  ;;  %vm1148_vm7 = vcmask 1043459   ;;  %vm1154_vm9 = vcmask 1045509  }
 0x120   : > { %v260_v4 = vsel %vm257_vm8, %v259_v63, %v255_v2  ;;  %v264_v7 = vsub.f32 1.0, %v263_v0  ;;  %v285_v40 = vsel %vm1744_vm15, %v1709_v55, %v281_v23  ;;  %v1425_v63 = vunpack.c.l.bf16 %v1459_v44 }
 0x121   : > { %v1717_v9 = vmul.f32 %v1667_v29, %v260_v4  ;;  %v1740_v29 = vpop.eup %1521  ;;  %v290_v42 = vsel %vm287_vm1, %v289_v37, %v285_v40  ;;  %v1426_v0 = vunpack.c.h.bf16 %v1459_v44  ;;  %v1108_v37 = vld [vmem:[%s1907_s2 + $0x8] sm:$0xff]  ;;  %vm1151_vm8 = vcmask 1044484  }
 0x122   : > { %v265_v12 = vmul.f32 %v1520_v61, %v264_v7  ;;  %v293_v41 = vmul.f32 %v1740_v29, %v1714_v6  ;;  %v1769_v49 = vmul.f32 %v1665_v27, %v290_v42  ;;  %vm298_vm3 = vweird.f32 %v1740_v29 }
 0x123   : > { %1345 = vmatmul.msk.f32.vlgmr.msra.gmra.mxu1 %vm210_vm0, %v1717_v9  ;;  %v376_v15 = vrot.slane %v1717_v9, 2  ;;  %v377_v16 = vrot.slane %v1717_v9, 3  ;;  %v375_v31 = vrot.slane %v1717_v9, 1  ;;  %v381_v38 = vrot.slane %v1717_v9, 7  ;;  %vm1788_vm4 = vmor %vm297_vm2, %vm298_vm3 }
 0x124   : > { %v266_v18 = vadd.f32 %v1520_v61, %v265_v12  ;;  %530 = vmatpush.msra.mxu1 %v1398_v8  ;;  %v294_v45 = vsub.f32 1.0, %v293_v41  ;;  %v379_v48 = vrot.slane %v1717_v9, 5  ;;  %v380_v53 = vrot.slane %v1717_v9, 6 }
 0x125   : > { %1347 = vmatmul.msk.f32.vlgmr.msra.gmra.mxu2 %vm210_vm0, %v376_v15  ;;  %1348 = vmatmul.msk.f32.vlgmr.msra.gmra.mxu3 %vm210_vm0, %v377_v16  ;;  %v303_v27 = vand.u32 2147483648, %v1714_v6  ;;  %v392_v62 = vrot.slane %v1769_v49, 4  ;;  %v1461_v6 = vld [vmem:[%s1689_s7 + $0x58] sm:$0xff]   ;;  %v1430_v7 = vunpack.c.h.bf16 %v1738_v28  ;;  %v389_v15 = vrot.slane %v1769_v49, 1 }
 0x126   : > { %v270_v19 = vsel %vm269_vm11, %v1520_v61, %v266_v18  ;;  %552 = vmatpush.msra.mxu2 %v1401_v10  ;;  %596 = vmatpush.msra.mxu3 %v1405_v11  ;;  %v295_v55 = vmul.f32 %v1740_v29, %v294_v45  ;;  %v1433_v10 = vunpack.c.l.bf16 %v1461_v6  ;;  %v1434_v11 = vunpack.c.h.bf16 %v1461_v6 }
 0x127   : > { %v275_v21 = vsel %vm272_vm14, %v274_v14, %v270_v19  ;;  %v304_v1 = vor.u32 1.1754944e-38, %v303_v27  ;;  %v1463_v14 = vld [vmem:[%s1689_s7 + $0x68] sm:$0xff]   ;;  %v390_v19 = vrot.slane %v1769_v49, 2  ;;  %v391_v20 = vrot.slane %v1769_v49, 3 }
 0x128   : > { %v1735_v25 = vmul.f32 %v1675_v33, %v275_v21  ;;  %v378_v33 = vrot.slane %v1717_v9, 4  ;;  %v296_v56 = vadd.f32 %v1740_v29, %v295_v55  ;;  %v1441_v17 = vunpack.c.l.bf16 %v1463_v14  ;;  %v1465_v21 = vld [vmem:[%s1689_s7 + $0x78] sm:$0xff]   ;;  %s1543_s7 = scalar_lea.hbm %s1908_s3, 64 }
 0x129   : > { %v1442_v18 = vunpack.c.h.bf16 %v1463_v14  ;;  %v393_v23 = vrot.slane %v1769_v49, 5  ;;  %v1449_v24 = vunpack.c.l.bf16 %v1465_v21  ;;  %v395_v28 = vrot.slane %v1769_v49, 7  ;;  %p1545_p2 = scmp.lt.s32.totalorder %s1543_s7, %s1539_s4 }
 0x12a   : > { %v385_v34 = vrot.slane %v1735_v25, 4  ;;  %v382_v61 = vrot.slane %v1735_v25, 1  ;;  %v383_v2 = vrot.slane %v1735_v25, 2  ;;  %v384_v3 = vrot.slane %v1735_v25, 3 }
 0x12b   : > { %1346 = vmatmul.msk.f32.vlgmr.msrb.gmra.mxu1 %vm210_vm0, %v375_v31  ;;  %v300_v4 = vsel %vm1788_vm4, %v1740_v29, %v296_v56  ;;  %v386_v8 = vrot.slane %v1735_v25, 5  ;;  %v387_v12 = vrot.slane %v1735_v25, 6  ;;  %v388_v13 = vrot.slane %v1735_v25, 7  ;;  %p1546_p3 = por %p1545_p2, %p1544_p1 }
 0x12c   : > { %1357 = vmatmul.msk.f32.vlgmr.msra.gmra.mxu0 %vm210_vm0, %v385_v34  ;;  %618 = vmatpush.msrb.mxu1 %v1406_v26  ;;  %v305_v5 = vsel %vm302_vm5, %v304_v1, %v300_v4  ;;  %v394_v26 = vrot.slane %v1769_v49, 6  ;;  %vm1157_vm10 = vcmask 1046534   ;;  %vm1160_vm11 = vcmask 1047559  }
 0x12d   : > { %1349 = vmatmul.msk.f32.vlgmr.msrb.gmra.mxu2 %vm210_vm0, %v378_v33  ;;  %1352 = vmatmul.msk.f32.vlgmr.msrb.gmra.mxu3 %vm210_vm0, %v381_v38  ;;  %v306_v9 = vmul.f32 %v1673_v32, %v305_v5  ;;  %v1438_v32 = vunpack.c.h.bf16 %v1765_v47  ;;  %v1107_v33 = vld [vmem:[%s1907_s2] sm:$0xff]  ;;  %p1547_p4 = pnand %p1546_p3, %p1542_p0 }
 0x12e   : > { %640 = vmatpush.msrb.mxu2 %v1409_v35  ;;  %662 = vmatpush.msrb.mxu3 %v1410_v36 }
 0x12f   : > { %860 = vmatpush.msra.mxu0 %v1429_v39  ;;  %v399_v16 = vrot.slane %v306_v9, 4  ;;  %v396_v29 = vrot.slane %v306_v9, 1  ;;  %v397_v30 = vrot.slane %v306_v9, 2  ;;  %v398_v31 = vrot.slane %v306_v9, 3 }
 0x130   : > { %v400_v34 = vrot.slane %v306_v9, 5  ;;  %v401_v35 = vrot.slane %v306_v9, 6  ;;  %v402_v36 = vrot.slane %v306_v9, 7 }
 0x133   : > { %1350 = vmatmul.msk.f32.vlgmr.msra.gmra.mxu1 %vm210_vm0, %v379_v48 }
 0x134   : > { %1361 = vmatmul.msk.f32.vlgmr.msrb.gmra.mxu0 %vm210_vm0, %v1769_v49  ;;  %706 = vmatpush.msra.mxu1 %v1414_v46 }
 0x135   : > { %1351 = vmatmul.msk.f32.vlgmr.msra.gmra.mxu2 %vm210_vm0, %v380_v53  ;;  %1353 = vmatmul.msk.f32.vlgmr.msra.gmra.mxu3 %vm210_vm0, %v1735_v25  ;;  %v1450_v25 = vunpack.c.h.bf16 %v1465_v21 }
 0x136   : > { %728 = vmatpush.msra.mxu2 %v1417_v51  ;;  %750 = vmatpush.msra.mxu3 %v1418_v52 }
 0x137   : > { %948 = vmatpush.msrb.mxu0 %v1437_v54 }
 0x13b   : > { %1354 = vmatmul.msk.f32.vlgmr.msrb.gmra.mxu1 %vm210_vm0, %v382_v61 }
 0x13c   : > { %1365 = vmatmul.msk.f32.vlgmr.msra.gmra.mxu0 %vm210_vm0, %v392_v62  ;;  %794 = vmatpush.msrb.mxu1 %v1422_v58 }
 0x13d   : > { %1355 = vmatmul.msk.f32.vlgmr.msrb.gmra.mxu2 %vm210_vm0, %v383_v2  ;;  %1356 = vmatmul.msk.f32.vlgmr.msrb.gmra.mxu3 %vm210_vm0, %v384_v3 }
 0x13e   : > { %816 = vmatpush.msrb.mxu2 %v1425_v63  ;;  %838 = vmatpush.msrb.mxu3 %v1426_v0 }
 0x13f   : > { %1036 = vmatpush.msra.mxu0 %v1445_v50 }
 0x143   : > { %1358 = vmatmul.msk.f32.vlgmr.msra.gmra.mxu1 %vm210_vm0, %v386_v8 }
 0x144   : > { %1369 = vmatmul.msk.f32.vlgmr.msrb.gmra.mxu0 %vm210_vm0, %v306_v9  ;;  %882 = vmatpush.msra.mxu1 %v1430_v7 }
 0x145   : > { %1359 = vmatmul.msk.f32.vlgmr.msra.gmra.mxu2 %vm210_vm0, %v387_v12  ;;  %1360 = vmatmul.msk.f32.vlgmr.msra.gmra.mxu3 %vm210_vm0, %v388_v13 }
 0x146   : > { %904 = vmatpush.msra.mxu2 %v1433_v10  ;;  %926 = vmatpush.msra.mxu3 %v1434_v11 }
 0x147   : > { %1227 = vmatpush.msrb.mxu0 %v1108_v37 }
 0x149   : > { %1228 = vmatpush.msrb.mxu0 %v1107_v33 }
 0x14b   : > { %1362 = vmatmul.msk.f32.vlgmr.msrb.gmra.mxu1 %vm210_vm0, %v389_v15 }
 0x14c   : > { %1373 = vmatmul.msk.f32.vlgmr.msra.gmra.mxu0 %vm210_vm0, %v399_v16  ;;  %970 = vmatpush.msrb.mxu1 %v1438_v32 }
 0x14d   : > { %1363 = vmatmul.msk.f32.vlgmr.msrb.gmra.mxu2 %vm210_vm0, %v390_v19  ;;  %1364 = vmatmul.msk.f32.vlgmr.msrb.gmra.mxu3 %vm210_vm0, %v391_v20 }
 0x14e   : > { %992 = vmatpush.msrb.mxu2 %v1441_v17  ;;  %1014 = vmatpush.msrb.mxu3 %v1442_v18 }
 0x153   : > { %1366 = vmatmul.msk.f32.vlgmr.msra.gmra.mxu1 %vm210_vm0, %v393_v23 }
 0x154   : > { %1058 = vmatpush.msra.mxu1 %v1446_v22 }
 0x155   : > { %1367 = vmatmul.msk.f32.vlgmr.msra.gmra.mxu2 %vm210_vm0, %v394_v26  ;;  %1368 = vmatmul.msk.f32.vlgmr.msra.gmra.mxu3 %vm210_vm0, %v395_v28 }
 0x156   : > { %1080 = vmatpush.msra.mxu2 %v1449_v24  ;;  %1102 = vmatpush.msra.mxu3 %v1450_v25 }
 0x15b   : > { %1370 = vmatmul.msk.f32.vlgmr.msrb.gmra.mxu1 %vm210_vm0, %v396_v29 }
 0x15d   : > { %1371 = vmatmul.msk.f32.vlgmr.msrb.gmra.mxu2 %vm210_vm0, %v397_v30  ;;  %1372 = vmatmul.msk.f32.vlgmr.msrb.gmra.mxu3 %vm210_vm0, %v398_v31 }
 0x163   : > { %1374 = vmatmul.msk.f32.vlgmr.msra.gmra.mxu1 %vm210_vm0, %v400_v34 }
 0x165   : > { %1375 = vmatmul.msk.f32.vlgmr.msra.gmra.mxu2 %vm210_vm0, %v401_v35  ;;  %1376 = vmatmul.msk.f32.vlgmr.msra.gmra.mxu3 %vm210_vm0, %v402_v36  ;;  %vm1145_vm0 = vcmask 1042434  }
 0x1a0   : > { %v422_v38 = vpop.f32.mrf.mxu1 }
 0x1a8   : > { %v444_v39 = vpop.f32.mrf.mxu1  ;;  %v466_v40 = vpop.f32.mrf.mxu2 }
 0x1a9   : > { %v488_v41 = vpop.f32.mrf.mxu3  ;;  %v1141_v42 = vrot.slane %v444_v39, 7  ;;  %v1144_v43 = vrot.slane %v466_v40, 6  ;;  %v686_v58 = vpop.f32.mrf.mxu0 }
 0x1aa   : > { %v1147_v52 = vrot.slane %v488_v41, 5  ;;  %v1168_v8 = vrot.slane %v686_v58, 4 }
 0x1ab   : > { %v1143_v45 = vsel %vm1142_vm6, %v1141_v42, %v422_v38 }
 0x1ac   : > { %v1146_v49 = vsel %vm1145_vm0, %v1144_v43, %v1143_v45 }
 0x1ad   : > { %v1149_v53 = vsel %vm1148_vm7, %v1147_v52, %v1146_v49 }
 0x1b0   : > { %v510_v46 = vpop.f32.mrf.mxu2  ;;  %v532_v47 = vpop.f32.mrf.mxu1 }
 0x1b1   : > { %v576_v48 = vpop.f32.mrf.mxu3  ;;  %v1150_v51 = vrot.slane %v510_v46, 4  ;;  %v1153_v54 = vrot.slane %v532_v47, 3  ;;  %v774_v6 = vpop.f32.mrf.mxu0 }
 0x1b2   : > { %v1159_v60 = vrot.slane %v576_v48, 1 }
 0x1b3   : > { %v1152_v55 = vsel %vm1151_vm8, %v1150_v51, %v1149_v53 }
 0x1b4   : > { %v1155_v59 = vsel %vm1154_vm9, %v1153_v54, %v1152_v55 }
 0x1b8   : > { %v554_v27 = vpop.f32.mrf.mxu2  ;;  %v620_v44 = vpop.f32.mrf.mxu1 }
 0x1b9   : > { %v1156_v56 = vrot.slane %v554_v27, 2  ;;  %v598_v57 = vpop.f32.mrf.mxu3  ;;  %v1162_v63 = vrot.slane %v620_v44, 7  ;;  %v862_v18 = vpop.f32.mrf.mxu0 }
 0x1ba   : > { %v1182_v29 = vrot.slane %v862_v18, 4 }
 0x1bb   : > { %v1158_v61 = vsel %vm1157_vm10, %v1156_v56, %v1155_v59  ;;  %v1163_v50 = vsel %vm1142_vm6, %v1162_v63, %v598_v57 }
 0x1bc   : > { %v1161_v62 = vsel %vm1160_vm11, %v1159_v60, %v1158_v61 }
 0x1bd   : > { %1377 = vmatmul.msk.f32.vlgmr.msrb.gmra.mxu0 %vm1204_vm12, %v1161_v62 }
 0x1c0   : > { %v642_v0 = vpop.f32.mrf.mxu2  ;;  %v708_v1 = vpop.f32.mrf.mxu1 }
 0x1c1   : > { %v1164_v2 = vrot.slane %v642_v0, 6  ;;  %v664_v3 = vpop.f32.mrf.mxu3  ;;  %v1170_v10 = vrot.slane %v708_v1, 3  ;;  %v950_v31 = vpop.f32.mrf.mxu0 }
 0x1c2   : > { %v1166_v4 = vrot.slane %v664_v3, 5 }
 0x1c3   : > { %v1165_v5 = vsel %vm1145_vm0, %v1164_v2, %v1163_v50 }
 0x1c4   : > { %v1167_v7 = vsel %vm1148_vm7, %v1166_v4, %v1165_v5 }
 0x1c5   : > { %v1169_v9 = vsel %vm1151_vm8, %v1168_v8, %v1167_v7 }
 0x1c6   : > { %v1171_v32 = vsel %vm1154_vm9, %v1170_v10, %v1169_v9 }
 0x1c8   : > { %v730_v11 = vpop.f32.mrf.mxu2  ;;  %v796_v12 = vpop.f32.mrf.mxu1 }
 0x1c9   : > { %v1172_v13 = vrot.slane %v730_v11, 2  ;;  %v752_v14 = vpop.f32.mrf.mxu3  ;;  %v1176_v19 = vrot.slane %v796_v12, 7  ;;  %v1038_v47 = vpop.f32.mrf.mxu0 }
 0x1ca   : > { %v1174_v15 = vrot.slane %v752_v14, 1  ;;  %v1196_v53 = vrot.slane %v1038_v47, 4 }
 0x1cb   : > { %v1173_v16 = vsel %vm1157_vm10, %v1172_v13, %v1171_v32  ;;  %v1177_v24 = vsel %vm1142_vm6, %v1176_v19, %v774_v6 }
 0x1cc   : > { %v1175_v17 = vsel %vm1160_vm11, %v1174_v15, %v1173_v16 }
 0x1cd   : > { %1378 = vmatmul.msk.f32.gmra.mxu0 %vm1204_vm12, %v1175_v17 }
 0x1d0   : > { %v818_v20 = vpop.f32.mrf.mxu2  ;;  %v884_v23 = vpop.f32.mrf.mxu1 }
 0x1d1   : > { %v1178_v21 = vrot.slane %v818_v20, 6  ;;  %v840_v22 = vpop.f32.mrf.mxu3  ;;  %v1184_v34 = vrot.slane %v884_v23, 3 }
 0x1d2   : > { %v1180_v25 = vrot.slane %v840_v22, 5 }
 0x1d3   : > { %v1179_v26 = vsel %vm1145_vm0, %v1178_v21, %v1177_v24 }
 0x1d4   : > { %v1181_v28 = vsel %vm1148_vm7, %v1180_v25, %v1179_v26 }
 0x1d5   : > { %v1183_v30 = vsel %vm1151_vm8, %v1182_v29, %v1181_v28 }
 0x1d6   : > { %v1185_v33 = vsel %vm1154_vm9, %v1184_v34, %v1183_v30 }
 0x1d8   : > { %v906_v35 = vpop.f32.mrf.mxu2  ;;  %v972_v39 = vpop.f32.mrf.mxu1 }
 0x1d9   : > { %v1186_v36 = vrot.slane %v906_v35, 2  ;;  %v928_v37 = vpop.f32.mrf.mxu3  ;;  %v1190_v42 = vrot.slane %v972_v39, 7 }
 0x1da   : > { %v1188_v38 = vrot.slane %v928_v37, 1 }
 0x1db   : > { %v1187_v40 = vsel %vm1157_vm10, %v1186_v36, %v1185_v33  ;;  %v1191_v48 = vsel %vm1142_vm6, %v1190_v42, %v950_v31 }
 0x1dc   : > { %v1189_v41 = vsel %vm1160_vm11, %v1188_v38, %v1187_v40 }
 0x1dd   : > { %1379 = vmatmul.msk.f32.gmra.mxu0 %vm1204_vm12, %v1189_v41 }
 0x1e0   : > { %v994_v43 = vpop.f32.mrf.mxu2  ;;  %v1060_v54 = vpop.f32.mrf.mxu1 }
 0x1e1   : > { %v1192_v45 = vrot.slane %v994_v43, 6  ;;  %v1016_v46 = vpop.f32.mrf.mxu3  ;;  %v1198_v27 = vrot.slane %v1060_v54, 3 }
 0x1e2   : > { %v1194_v49 = vrot.slane %v1016_v46, 5 }
 0x1e3   : > { %v1193_v51 = vsel %vm1145_vm0, %v1192_v45, %v1191_v48 }
 0x1e4   : > { %v1195_v52 = vsel %vm1148_vm7, %v1194_v49, %v1193_v51 }
 0x1e5   : > { %v1197_v55 = vsel %vm1151_vm8, %v1196_v53, %v1195_v52 }
 0x1e6   : > { %v1199_v58 = vsel %vm1154_vm9, %v1198_v27, %v1197_v55 }
 0x1e8   : > { %v1082_v44 = vpop.f32.mrf.mxu2 }
 0x1e9   : > { %v1200_v56 = vrot.slane %v1082_v44, 2  ;;  %v1104_v57 = vpop.f32.mrf.mxu3 }
 0x1ea   : > { %v1202_v59 = vrot.slane %v1104_v57, 1 }
 0x1eb   : > { %v1201_v60 = vsel %vm1157_vm10, %v1200_v56, %v1199_v58 }
 0x1ec   : > { %v1203_v61 = vsel %vm1160_vm11, %v1202_v59, %v1201_v60 }
 0x1ed   : > { %1380 = vmatmul.msk.f32.gmra.mxu0 %vm1204_vm12, %v1203_v61 }
 0x23a   : > { %v1230_v62 = vpop.f32.mrf.mxu0 }
 0x23b   : > { %1242 = vst [vmem:[%s180_s19] sm:$0xff] %v1230_v62 }
 0x24a   : > { %v1233_v63 = vpop.f32.mrf.mxu0 }
 0x24b   : > { %1243 = vst [vmem:[%s180_s19 + $0x8] sm:$0xff] %v1233_v63 }
 0x25a   : > { %v1236_v0 = vpop.f32.mrf.mxu0 }
 0x25b   : > { %1244 = vst [vmem:[%s180_s19 + $0x10] sm:$0xff] %v1236_v0 }
 0x26a   : > { %v1239_v1 = vpop.f32.mrf.mxu0 }
 0x26b   : > { %1245 = vst [vmem:[%s180_s19 + $0x18] sm:$0xff] %v1239_v1 }
 0x26c   : > { %1550 = shalt.err (!%p1547_p4)
}
 0x26d   : > { %s1587_s9 = smov 128   ;;  %s1588_s10 = smov 8  }
 0x26e   : > { %1466 = dma.vmem_to_hbm [thread:$0]  (%p1647_p5), %s1260_s26, 512, %s1262_s27, %s1247_s28, %s1587_s9, %s1587_s9, %s1588_s10  }
 0x26f PF: > { %p1472_p7 = scmp.ge.s32.totalorder %s1585_s15, 2  ;;  %s1276_s11 = sand.u32 1, %s1573_s12  }
 0x270   : > { %s1277_s16 = scalar_lea.sflag [#allocation3], %s1276_s11 }
 0x271   : > { %p1469_p8 = pnand %p1472_p7, %p1651_p6 }
 0x273   : > { %p1470_p9 = pneg %p1469_p8 }
 0x275   : > { %1568 = dma.done.wait (%p1470_p9), %s1277_s16, 512  }
 0x276   : > { %1570 = vsyncadd (%p1470_p9), %s1277_s16, 4294966784  ;;  %p13_p10 = scmp.ge.s32.totalorder %s1634_s18, 4   ;;  %s1915_s12 = smov %s1577_s13 }
 0x277   : > { %s1916_s13 = smov %s1581_s14  ;;  %s1917_s14 = smov %s1645_s21 }
 0x278   : > { %s1918_s15 = smov %s1634_s18  ;;  %15 = sbr.rel (!%p13_p10) target bundleno = 3 (0x3), region = 70 }
 0x27d   :  { %1283 = vsyncpa [#allocation3], 1 }
 0x27e   :  { %1285 = vsyncpa [#allocation3 + $0x1], 1 }

</bundles_post_ra>
